<compile_context>
chip_gen: v7x
topology: tpu7x:2x2x1
jax: 0.10.0
libtpu: 0.0.40
codegen_flags: <defaults>
</compile_context>

<pallas_src>
from functools import partial

import jax
import jax.numpy as jnp
from jax.experimental import pallas as pl
from jax.experimental.pallas import tpu as pltpu


def _encdec_kernel(enc_x_ref, dec_x_ref,
                   w_enc_ref, b_enc_ref,
                   w_dx_ref, w_dc_ref, b_dec_ref,
                   w_out_ref, b_out_ref,
                   out_ref,
                   dec_h_ref,
                   *, bt, S, T):
    # enc_x_ref: (bt*S, Dp) bf16   dec_x_ref: (bt*T, Dp) bf16
    # w_enc/w_dx: (Dp, Hp) bf16    w_dc: (Hp, Hp) bf16    w_out_ref: (Hp, TV) bf16
    # biases: (1, Hp/TV) f32       out_ref: (bt*T, TV)    dec_h_ref: (bt*T, Hp) bf16
    Hp = w_enc_ref.shape[-1]

    # Encoder + Decoder.init_state + decoder hidden are vocab-independent:
    # compute once per batch tile (v == 0) into VMEM scratch, reuse per V tile.
    @pl.when(pl.program_id(1) == 0)
    def _():
        # ---- Encoder: (bt*S, Dp) @ (Dp, Hp) MXU pass, f32 accumulation ----
        enc_h = jnp.tanh(
            jnp.dot(enc_x_ref[...], w_enc_ref[...],
                    preferred_element_type=jnp.float32)
            + b_enc_ref[...])                                   # (bt*S, Hp) f32

        # ---- Decoder.init_state: per-batch mean-pool over encoder sequence ----
        ctx = jnp.mean(enc_h.reshape(bt, S, Hp), axis=1)        # (bt, Hp) f32

        # ---- Decoder body: split matmuls (no lane-concat copy of dec_x) ----
        ctx_proj = jnp.dot(ctx.astype(w_dc_ref.dtype), w_dc_ref[...],
                           preferred_element_type=jnp.float32)  # (bt, Hp) f32
        dec_xh = jnp.dot(dec_x_ref[...], w_dx_ref[...],
                         preferred_element_type=jnp.float32)    # (bt*T, Hp) f32
        dec_h = jnp.maximum(
            dec_xh.reshape(bt, T, Hp) + ctx_proj[:, None, :] + b_dec_ref[...],
            0.0)                                                # (bt, T, Hp) f32
        dec_h_ref[...] = dec_h.reshape(bt * T, Hp).astype(dec_h_ref.dtype)

    # ---- Output head: one (bt*T, Hp) @ (Hp, TV) MXU pass per vocab tile ----
    out = (jnp.dot(dec_h_ref[...], w_out_ref[...],
                   preferred_element_type=jnp.float32)
           + b_out_ref[...])                                    # (bt*T, TV) f32
    out_ref[...] = out.astype(out_ref.dtype)


def _pad2d(x, rows, cols):
    if x.shape == (rows, cols):
        return x
    return jnp.pad(x, ((0, rows - x.shape[0]), (0, cols - x.shape[1])))


def _tpu_chip_info():
    """Best-effort (device-kind string, TensorCores per chip)."""
    kind = ""
    try:
        kind = (jax.devices()[0].device_kind or "").lower()
    except Exception:
        pass
    multi_tc = any(t in kind for t in ("v7", "v4", "v5p"))
    return kind, (2 if multi_tc else 1)


def encoder_decoder_forward(enc_x, dec_x, params, *, lane=128, tv_max=512,
                            mxu_dtype=jnp.bfloat16, out_dtype=jnp.float32):
    """enc_x: (B, S, D), dec_x: (B, T, D) -> (B, T, V)."""
    B, S, D = enc_x.shape
    _, T, D2 = dec_x.shape
    assert D2 == D
    H = params["w_enc"].shape[1]
    V = params["w_out"].shape[1]
    f32 = jnp.float32

    # f32 sublane alignment so the in-kernel (bt, S/T, Hp) reshapes stay free views.
    # TODO(synk): mask-and-pad S/T in the wrapper (mean over true S) if unaligned.
    assert S % 8 == 0 and T % 8 == 0, "S and T must be multiples of 8"

    kind, n_tc = _tpu_chip_info()

    # Lane-dense padded feature dims (multiples of 128); Vp also a multiple of
    # the vocab tile TV so the inner grid axis divides evenly.
    Dp = pl.cdiv(D, lane) * lane
    Hp = pl.cdiv(H, lane) * lane
    Vp0 = pl.cdiv(V, lane) * lane
    TV = min(Vp0, tv_max)
    Vp = pl.cdiv(Vp0, TV) * TV
    grid_v = Vp // TV

    # Batch tile: fill the MXU (~target rows per step) and amortize the
    # ~600-cycle per-grid-step overhead; only multi-TensorCore chips keep the
    # grid >= 2 over batch so both cores get work.
    target_rows = 256 if ("v5 lite" in kind or "v5e" in kind) else 512
    bt = max(1, target_rows // max(S, T, 1))
    if n_tc > 1 and B >= 2:
        bt = min(bt, B // 2)
    bt = max(1, min(bt, B))
    grid_b = pl.cdiv(B, bt)
    Bp = grid_b * bt

    # ---- Wrapper-side padding / packing (skipped when already aligned) ----
    def pack_act(x, L):
        if Bp == B and Dp == D:
            return x.reshape(B * L, D).astype(mxu_dtype)
        xp = jnp.pad(x, ((0, Bp - B), (0, 0), (0, Dp - D)))
        return xp.reshape(Bp * L, Dp).astype(mxu_dtype)   # 2-D lane-dense slab

    enc_xp = pack_act(enc_x, S)
    dec_xp = pack_act(dec_x, T)

    w_enc = _pad2d(params["w_enc"], Dp, Hp).astype(mxu_dtype)
    b_enc = _pad2d(params["b_enc"], 1, Hp).astype(f32)
    w_dx = _pad2d(params["w_dx"], Dp, Hp).astype(mxu_dtype)
    w_dc = _pad2d(params["w_dc"], Hp, Hp).astype(mxu_dtype)
    b_dec = _pad2d(params["b_dec"], 1, Hp).astype(f32)
    w_out = _pad2d(params["w_out"], Hp, Vp).astype(mxu_dtype)
    b_out = _pad2d(params["b_out"], 1, Vp).astype(f32)

    # ---- Explicit scoped-VMEM limit sized from the actual resident buffers ----
    out_isz = jnp.dtype(out_dtype).itemsize
    vmem_bytes = (
        2 * (Dp * Hp + Dp * Hp + Hp * Hp) + 4 * (2 * Hp)        # Buffered(1) weights/biases
        + 2 * (2 * bt * S * Dp + 2 * bt * T * Dp                # double-buffered activations
               + 2 * Hp * TV + 4 * TV                           # streamed w_out / b_out tile
               + out_isz * bt * T * TV)                         # output tile
        + 2 * bt * T * Hp)                                      # dec_h scratch (bf16)
    vmem_cap = (56 << 20) if "v7" in kind else (100 << 20)
    vmem_limit = int(min(max(int(vmem_bytes * 1.25) + (2 << 20), 16 << 20), vmem_cap))

    # ---- Cost estimate (lets XLA schedule around the custom call) ----
    flops = 2 * Bp * (S * Dp * Hp + T * Dp * Hp + Hp * Hp + T * Hp * Vp)
    nbytes = lambda a: int(a.size) * a.dtype.itemsize
    bytes_accessed = (nbytes(enc_xp) + nbytes(dec_xp)
                      + nbytes(w_enc) + nbytes(b_enc)
                      + nbytes(w_dx) + nbytes(w_dc) + nbytes(b_dec)
                      + nbytes(w_out) + nbytes(b_out)
                      + Bp * T * Vp * out_isz)

    # Weights/biases never change block index -> single-buffer (halves their
    # VMEM footprint; double-buffering them buys zero overlap).
    def resident(arr):
        try:
            return pl.BlockSpec(arr.shape, lambda b, v: (0, 0),
                                pipeline_mode=pl.Buffered(1))
        except TypeError:   # older BlockSpec signature without pipeline_mode
            return pl.BlockSpec(arr.shape, lambda b, v: (0, 0))

    out = pl.pallas_call(
        partial(_encdec_kernel, bt=bt, S=S, T=T),
        out_shape=jax.ShapeDtypeStruct((Bp * T, Vp), out_dtype),
        grid_spec=pltpu.PrefetchScalarGridSpec(
            num_scalar_prefetch=0,
            grid=(grid_b, grid_v),                               # vocab innermost
            in_specs=[
                pl.BlockSpec((bt * S, Dp), lambda b, v: (b, 0)),  # enc_X rows
                pl.BlockSpec((bt * T, Dp), lambda b, v: (b, 0)),  # dec_X rows
                resident(w_enc), resident(b_enc),
                resident(w_dx), resident(w_dc), resident(b_dec),
                # Output head streams per-V tile; keep default double-buffering
                # so its DMA overlaps the previous tile's MXU pass.
                pl.BlockSpec((Hp, TV), lambda b, v: (0, v)),
                pl.BlockSpec((1, TV), lambda b, v: (0, v)),
            ],
            out_specs=pl.BlockSpec((bt * T, TV), lambda b, v: (b, v)),
            scratch_shapes=[pltpu.VMEM((bt * T, Hp), mxu_dtype)],  # dec_h reuse
        ),
        compiler_params=pltpu.CompilerParams(
            dimension_semantics=("parallel", "arbitrary"),
            vmem_limit_bytes=vmem_limit),
        cost_estimate=pl.CostEstimate(
            flops=flops,
            transcendentals=Bp * S * Hp,      # tanh
            bytes_accessed=bytes_accessed),
    )(enc_xp, dec_xp, w_enc, b_enc, w_dx, w_dc, b_dec, w_out, b_out)

    # Unpack lane-dense slab: drop batch / vocab padding.
    return out.reshape(Bp, T, Vp)[:B, :, :V]
    # TODO(synk): the abstract PyTorch Decoder would also return dec_state (ctx);
    # add it as a second lane-dense output if a caller needs it.


def _init_params(key, D, H, V):
    """Deterministic nn.Linear-style init (uniform +-1/sqrt(fan_in)), f32."""
    ks = jax.random.split(key, 8)
    u = lambda k, shape, fan_in: jax.random.uniform(
        k, shape, jnp.float32, -1.0 / (fan_in ** 0.5), 1.0 / (fan_in ** 0.5))
    return {
        "w_enc": u(ks[0], (D, H), D),
        "b_enc": u(ks[1], (1, H), D),
        "w_dx":  u(ks[2], (D, H), D + H),
        "w_dc":  u(ks[3], (H, H), D + H),
        "b_dec": u(ks[4], (1, H), D + H),
        "w_out": u(ks[5], (H, V), H),
        "b_out": u(ks[6], (1, V), H),
    }


def _reference(enc_x, dec_x, p):
    """Pure-JAX reference with the same bf16-operand / f32-accumulate numerics."""
    bf, f32 = jnp.bfloat16, jnp.float32
    enc_h = jnp.tanh(
        jnp.einsum("bsd,dh->bsh", enc_x.astype(bf), p["w_enc"].astype(bf),
                   preferred_element_type=f32) + p["b_enc"])
    ctx = jnp.mean(enc_h, axis=1, keepdims=True)
    dec_h = (jnp.einsum("btd,dh->bth", dec_x.astype(bf), p["w_dx"].astype(bf),
                        preferred_element_type=f32)
             + jnp.einsum("bch,hk->bck", ctx.astype(bf), p["w_dc"].astype(bf),
                          preferred_element_type=f32)
             + p["b_dec"])
    dec_h = jnp.maximum(dec_h, 0.0)
    return (jnp.einsum("bth,hv->btv", dec_h.astype(bf), p["w_out"].astype(bf),
                       preferred_element_type=f32) + p["b_out"])


if __name__ == "__main__":
    B, S, T, D, H, V = 8, 8, 8, 16, 32, 16
    key = jax.random.PRNGKey(0)
    k_enc, k_dec, k_par = jax.random.split(key, 3)

    enc_x = jax.random.normal(k_enc, (B, S, D), jnp.float32)
    dec_x = jax.random.normal(k_dec, (B, T, D), jnp.float32)
    params = _init_params(k_par, D, H, V)

    out = encoder_decoder_forward(enc_x, dec_x, params)
    out = jax.block_until_ready(out)

    ref = _reference(enc_x, dec_x, params)
    assert out.shape == (B, T, V)
    assert jnp.allclose(out, ref, atol=1e-3, rtol=1e-3), "mismatch vs JAX reference"

    print("KERNEL_OK")
</pallas_src>

<mosaic_0001>
module attributes {stable_mosaic.version = 11 : i64} {
  func.func @_encdec_kernel(%arg0: i32, %arg1: i32, %arg2: memref<64x128xbf16, #tpu.memory_space<vmem>>, %arg3: memref<64x128xbf16, #tpu.memory_space<vmem>>, %arg4: memref<128x128xbf16, #tpu.memory_space<vmem>>, %arg5: memref<1x128xf32, #tpu.memory_space<vmem>>, %arg6: memref<128x128xbf16, #tpu.memory_space<vmem>>, %arg7: memref<128x128xbf16, #tpu.memory_space<vmem>>, %arg8: memref<1x128xf32, #tpu.memory_space<vmem>>, %arg9: memref<128x128xbf16, #tpu.memory_space<vmem>>, %arg10: memref<1x128xf32, #tpu.memory_space<vmem>>, %arg11: memref<64x128xf32, #tpu.memory_space<vmem>>, %arg12: memref<64x128xbf16, #tpu.memory_space<vmem>>) attributes {dimension_semantics = [#tpu.dimension_semantics<parallel>, #tpu.dimension_semantics<arbitrary>], iteration_bounds = array<i64: 1, 1>, scalar_prefetch = 0 : i64, scratch_operands = 1 : i64, tpu.core_type = #tpu.core_type<tc>, window_params = [{transform_indices = @transform_0, window_bounds = array<i64: 64, 128>}, {transform_indices = @transform_1, window_bounds = array<i64: 64, 128>}, {pipeline_mode = #tpu.pipeline_mode<synchronous>, transform_indices = @transform_2, window_bounds = array<i64: 128, 128>}, {pipeline_mode = #tpu.pipeline_mode<synchronous>, transform_indices = @transform_3, window_bounds = array<i64: 1, 128>}, {pipeline_mode = #tpu.pipeline_mode<synchronous>, transform_indices = @transform_4, window_bounds = array<i64: 128, 128>}, {pipeline_mode = #tpu.pipeline_mode<synchronous>, transform_indices = @transform_5, window_bounds = array<i64: 128, 128>}, {pipeline_mode = #tpu.pipeline_mode<synchronous>, transform_indices = @transform_6, window_bounds = array<i64: 1, 128>}, {transform_indices = @transform_7, window_bounds = array<i64: 128, 128>}, {transform_indices = @transform_8, window_bounds = array<i64: 1, 128>}, {transform_indices = @transform_9, window_bounds = array<i64: 64, 128>}]} {
    %c0_i32 = arith.constant 0 : i32
    %0 = arith.cmpi eq, %arg1, %c0_i32 : i32
    %1 = arith.extui %0 : i1 to i32
    %c0_i32_0 = arith.constant 0 : i32
    %2 = arith.cmpi ne, %1, %c0_i32_0 : i32
    scf.if %2 {
      %c0_8 = arith.constant 0 : index
      %c0_9 = arith.constant 0 : index
      %10 = vector.load %arg2[%c0_8, %c0_9] : memref<64x128xbf16, #tpu.memory_space<vmem>>, vector<64x128xbf16>
      %c0_10 = arith.constant 0 : index
      %c0_11 = arith.constant 0 : index
      %11 = vector.load %arg4[%c0_10, %c0_11] : memref<128x128xbf16, #tpu.memory_space<vmem>>, vector<128x128xbf16>
      %cst_12 = arith.constant dense<0.000000e+00> : vector<64x128xf32>
      %12 = tpu.matmul %10, %11, %cst_12 {dimension_numbers = #tpu.dot_dimension_numbers<[1], [0], [0], [1], [0, 0, 1, 1], [], []>} : vector<64x128xbf16>, vector<128x128xbf16>, vector<64x128xf32> -> vector<64x128xf32>
      %c0_13 = arith.constant 0 : index
      %c0_14 = arith.constant 0 : index
      %13 = vector.load %arg5[%c0_13, %c0_14] : memref<1x128xf32, #tpu.memory_space<vmem>>, vector<1x128xf32>
      %14 = vector.broadcast %13 : vector<1x128xf32> to vector<64x128xf32>
      %15 = arith.addf %12, %14 : vector<64x128xf32>
      %16 = math.tanh %15 : vector<64x128xf32>
      %17 = vector.shape_cast %16 : vector<64x128xf32> to vector<8x8x128xf32>
      %cst_15 = arith.constant dense<0.000000e+00> : vector<8x128xf32>
      %18 = vector.multi_reduction <add>, %17, %cst_15 [1] : vector<8x8x128xf32> to vector<8x128xf32>
      %cst_16 = arith.constant 8.000000e+00 : f32
      %19 = vector.broadcast %cst_16 : f32 to vector<8x128xf32>
      %20 = arith.divf %18, %19 : vector<8x128xf32>
      %21 = arith.truncf %20 : vector<8x128xf32> to vector<8x128xbf16>
      %c0_17 = arith.constant 0 : index
      %c0_18 = arith.constant 0 : index
      %22 = vector.load %arg7[%c0_17, %c0_18] : memref<128x128xbf16, #tpu.memory_space<vmem>>, vector<128x128xbf16>
      %cst_19 = arith.constant dense<0.000000e+00> : vector<8x128xf32>
      %23 = tpu.matmul %21, %22, %cst_19 {dimension_numbers = #tpu.dot_dimension_numbers<[1], [0], [0], [1], [0, 0, 1, 1], [], []>} : vector<8x128xbf16>, vector<128x128xbf16>, vector<8x128xf32> -> vector<8x128xf32>
      %c0_20 = arith.constant 0 : index
      %c0_21 = arith.constant 0 : index
      %24 = vector.load %arg3[%c0_20, %c0_21] : memref<64x128xbf16, #tpu.memory_space<vmem>>, vector<64x128xbf16>
      %c0_22 = arith.constant 0 : index
      %c0_23 = arith.constant 0 : index
      %25 = vector.load %arg6[%c0_22, %c0_23] : memref<128x128xbf16, #tpu.memory_space<vmem>>, vector<128x128xbf16>
      %cst_24 = arith.constant dense<0.000000e+00> : vector<64x128xf32>
      %26 = tpu.matmul %24, %25, %cst_24 {dimension_numbers = #tpu.dot_dimension_numbers<[1], [0], [0], [1], [0, 0, 1, 1], [], []>} : vector<64x128xbf16>, vector<128x128xbf16>, vector<64x128xf32> -> vector<64x128xf32>
      %27 = vector.shape_cast %26 : vector<64x128xf32> to vector<8x8x128xf32>
      %28 = vector.shape_cast %23 : vector<8x128xf32> to vector<8x1x128xf32>
      %29 = vector.broadcast %28 : vector<8x1x128xf32> to vector<8x8x128xf32>
      %30 = arith.addf %27, %29 : vector<8x8x128xf32>
      %c0_25 = arith.constant 0 : index
      %c0_26 = arith.constant 0 : index
      %31 = vector.load %arg8[%c0_25, %c0_26] : memref<1x128xf32, #tpu.memory_space<vmem>>, vector<1x128xf32>
      %32 = vector.shape_cast %31 : vector<1x128xf32> to vector<1x1x128xf32>
      %33 = vector.broadcast %32 : vector<1x1x128xf32> to vector<8x8x128xf32>
      %34 = arith.addf %30, %33 : vector<8x8x128xf32>
      %cst_27 = arith.constant 0.000000e+00 : f32
      %35 = vector.broadcast %cst_27 : f32 to vector<8x8x128xf32>
      %36 = arith.maximumf %34, %35 : vector<8x8x128xf32>
      %37 = vector.shape_cast %36 : vector<8x8x128xf32> to vector<64x128xf32>
      %38 = arith.truncf %37 : vector<64x128xf32> to vector<64x128xbf16>
      %c0_28 = arith.constant 0 : index
      %c0_29 = arith.constant 0 : index
      %39 = vector.load %arg12[%c0_28, %c0_29] : memref<64x128xbf16, #tpu.memory_space<vmem>>, vector<64x128xbf16>
      tpu.vector_store %arg12[%c0_28, %c0_29], %38 {strides = array<i32>} : memref<64x128xbf16, #tpu.memory_space<vmem>>, vector<64x128xbf16>,
    } else {
    }
    %c0 = arith.constant 0 : index
    %c0_1 = arith.constant 0 : index
    %3 = vector.load %arg12[%c0, %c0_1] : memref<64x128xbf16, #tpu.memory_space<vmem>>, vector<64x128xbf16>
    %c0_2 = arith.constant 0 : index
    %c0_3 = arith.constant 0 : index
    %4 = vector.load %arg9[%c0_2, %c0_3] : memref<128x128xbf16, #tpu.memory_space<vmem>>, vector<128x128xbf16>
    %cst = arith.constant dense<0.000000e+00> : vector<64x128xf32>
    %5 = tpu.matmul %3, %4, %cst {dimension_numbers = #tpu.dot_dimension_numbers<[1], [0], [0], [1], [0, 0, 1, 1], [], []>} : vector<64x128xbf16>, vector<128x128xbf16>, vector<64x128xf32> -> vector<64x128xf32>
    %c0_4 = arith.constant 0 : index
    %c0_5 = arith.constant 0 : index
    %6 = vector.load %arg10[%c0_4, %c0_5] : memref<1x128xf32, #tpu.memory_space<vmem>>, vector<1x128xf32>
    %7 = vector.broadcast %6 : vector<1x128xf32> to vector<64x128xf32>
    %8 = arith.addf %5, %7 : vector<64x128xf32>
    %c0_6 = arith.constant 0 : index
    %c0_7 = arith.constant 0 : index
    %9 = vector.load %arg11[%c0_6, %c0_7] : memref<64x128xf32, #tpu.memory_space<vmem>>, vector<64x128xf32>
    tpu.vector_store %arg11[%c0_6, %c0_7], %8 {strides = array<i32>} : memref<64x128xf32, #tpu.memory_space<vmem>>, vector<64x128xf32>,
    return
  }
  func.func @transform_0(%arg0: i32, %arg1: i32) -> (i32, i32) {
    %c0_i32 = arith.constant 0 : i32
    %c0_i32_0 = arith.constant 0 : i32
    return %arg0, %c0_i32 : i32, i32
  }
  func.func @transform_1(%arg0: i32, %arg1: i32) -> (i32, i32) {
    %c0_i32 = arith.constant 0 : i32
    %c0_i32_0 = arith.constant 0 : i32
    return %arg0, %c0_i32 : i32, i32
  }
  func.func @transform_2(%arg0: i32, %arg1: i32) -> (i32, i32) {
    %c0_i32 = arith.constant 0 : i32
    %c0_i32_0 = arith.constant 0 : i32
    %c0_i32_1 = arith.constant 0 : i32
    return %c0_i32, %c0_i32_0 : i32, i32
  }
  func.func @transform_3(%arg0: i32, %arg1: i32) -> (i32, i32) {
    %c0_i32 = arith.constant 0 : i32
    %c0_i32_0 = arith.constant 0 : i32
    %c0_i32_1 = arith.constant 0 : i32
    return %c0_i32, %c0_i32_0 : i32, i32
  }
  func.func @transform_4(%arg0: i32, %arg1: i32) -> (i32, i32) {
    %c0_i32 = arith.constant 0 : i32
    %c0_i32_0 = arith.constant 0 : i32
    %c0_i32_1 = arith.constant 0 : i32
    return %c0_i32, %c0_i32_0 : i32, i32
  }
  func.func @transform_5(%arg0: i32, %arg1: i32) -> (i32, i32) {
    %c0_i32 = arith.constant 0 : i32
    %c0_i32_0 = arith.constant 0 : i32
    %c0_i32_1 = arith.constant 0 : i32
    return %c0_i32, %c0_i32_0 : i32, i32
  }
  func.func @transform_6(%arg0: i32, %arg1: i32) -> (i32, i32) {
    %c0_i32 = arith.constant 0 : i32
    %c0_i32_0 = arith.constant 0 : i32
    %c0_i32_1 = arith.constant 0 : i32
    return %c0_i32, %c0_i32_0 : i32, i32
  }
  func.func @transform_7(%arg0: i32, %arg1: i32) -> (i32, i32) {
    %c0_i32 = arith.constant 0 : i32
    %c0_i32_0 = arith.constant 0 : i32
    return %c0_i32, %arg1 : i32, i32
  }
  func.func @transform_8(%arg0: i32, %arg1: i32) -> (i32, i32) {
    %c0_i32 = arith.constant 0 : i32
    %c0_i32_0 = arith.constant 0 : i32
    return %c0_i32, %arg1 : i32, i32
  }
  func.func @transform_9(%arg0: i32, %arg1: i32) -> (i32, i32) {
    %c0_i32 = arith.constant 0 : i32
    return %arg0, %arg1 : i32, i32
  }
}

</mosaic_0001>

<bundles_post_ra>
// kernel: tpu_custom_call.1
= control target key start
LH: loop header
LB: loop body
LE: loop exit
PB: predicated region body
PF: predicated region fallthrough
CT: control target
= control target key end

     0   :  { %14 = vsyncpa [#allocation4], 0  ;;  %s1569_s0 = inlined_call_operand.hbm [shape: bf16[64,128], index: 0, kind: input, shape index: {}]   ;;  %s1570_s1 = inlined_call_operand.hbm [shape: bf16[64,128], index: 1, kind: input, shape index: {}]   ;;  %s1571_s2 = inlined_call_operand.hbm [shape: bf16[128,128], index: 2, kind: input, shape index: {}]   ;;  %s1572_s3 = inlined_call_operand.vmem [shape: f32[1,128], index: 3, kind: input, shape index: {}]   ;;  %s1573_s4 = inlined_call_operand.hbm [shape: bf16[128,128], index: 4, kind: input, shape index: {}]   ;;  %s1574_s5 = inlined_call_operand.hbm [shape: bf16[128,128], index: 5, kind: input, shape index: {}]   ;;  %s1575_s6 = inlined_call_operand.vmem [shape: f32[1,128], index: 6, kind: input, shape index: {}]   ;;  %s1576_s7 = inlined_call_operand.hbm [shape: bf16[128,128], index: 7, kind: input, shape index: {}]   ;;  %s1577_s8 = inlined_call_operand.vmem [shape: f32[1,128], index: 8, kind: input, shape index: {}]   ;;  %s1578_s9 = inlined_call_operand.hbm [shape: f32[64,128], index: 9, kind: output, shape index: {}]  }
   0x1   :  { %15 = vsyncpa [#allocation7], 0 }
   0x2   :  { %16 = vsyncpa [#allocation10], 0 }
   0x3   :  { %17 = vsyncpa [#allocation13], 0 }
   0x4   :  { %18 = vsyncpa [#allocation5], 0  ;;  %s1369_s30 = smov [#allocation6]   ;;  %s1370_s11 = smov [#allocation9]  }
   0x5   :  { %s36_s10 = sshll.u32 %s1369_s30, 4  ;;  %s62_s12 = sshll.u32 %s1370_s11, 4  ;;  %s37_s10 = int_to_ptr.vmem [resolvable:$true] %s36_s10  ;;  %s1433_s12 = int_to_ptr.vmem [resolvable:$true] %s62_s12 }
   0x6   :  { %s1205_s15 = scalar_lea.hbm %s1570_s1, 512 }
   0x7   :  { %p1206_p0 = scmp.ne.s32.totalorder %s1570_s1, %s1205_s15  ;;  %p1209_p1 = scmp.lt.u32.totalorder %s1205_s15, %s1570_s1 }
   0x9   :  { %p1211_p2 = pnand %p1209_p1, %p1206_p0 }
   0xb   :  { %1214 = shalt.err (!%p1211_p2)
}
   0xc   :  { %s1215_s20 = scalar_lea.vmem %s37_s10, 512  ;;  %p1220_p4 = scmp.lt.s32.totalorder %s37_s10, %s37_s10 }
   0xd   :  { %p1216_p3 = scmp.ne.s32.totalorder %s37_s10, %s1215_s20  ;;  %p1221_p5 = scmp.lt.s32.totalorder %s1215_s20, %s1215_s20 }
   0xf   :  { %p1222_p6 = por %p1221_p5, %p1220_p4 }
  0x11   :  { %p1223_p7 = pnand %p1222_p6, %p1216_p3 }
  0x13   :  { %1226 = shalt.err (!%p1223_p7)
}
  0x14   :  { %s1371_s21 = smov 64   ;;  %s1372_s22 = smov 4  }
  0x15   :  { %42 = dma.hbm_to_vmem [thread:$0]  %s1570_s1, 512, %s37_s10, [#allocation7], %s1371_s21, %s1371_s21, %s1372_s22  }
  0x16   :  { %s1227_s27 = scalar_lea.hbm %s1573_s4, 1024 }
  0x17   :  { %p1228_p8 = scmp.ne.s32.totalorder %s1573_s4, %s1227_s27  ;;  %p1231_p9 = scmp.lt.u32.totalorder %s1227_s27, %s1573_s4 }
  0x19   :  { %p1233_p10 = pnand %p1231_p9, %p1228_p8 }
  0x1b   :  { %1236 = shalt.err (!%p1233_p10)
}
  0x1c   :  { %s1237_s13 = scalar_lea.vmem %s1433_s12, 1024  ;;  %p1242_p12 = scmp.lt.s32.totalorder %s1433_s12, %s1433_s12 }
  0x1d   :  { %p1238_p11 = scmp.ne.s32.totalorder %s1433_s12, %s1237_s13  ;;  %p1243_p13 = scmp.lt.s32.totalorder %s1237_s13, %s1237_s13 }
  0x1f   :  { %p1244_p0 = por %p1243_p13, %p1242_p12 }
  0x21   :  { %p1245_p1 = pnand %p1244_p0, %p1238_p11 }
  0x23   :  { %1248 = shalt.err (!%p1245_p1)
}
  0x24   :  { %68 = dma.hbm_to_vmem [thread:$0]  %s1573_s4, 1024, %s1433_s12, [#allocation10], %s1371_s21, %s1371_s21, %s1372_s22  }
  0x25   :  { %s1373_s14 = smov [#allocation3]   ;;  %s1374_s16 = smov [#allocation8]  }
  0x26   :  { %s24_s15 = sshll.u32 %s1373_s14, 4  ;;  %s48_s17 = sshll.u32 %s1374_s16, 4  ;;  %s25_s15 = int_to_ptr.vmem [resolvable:$true] %s24_s15  ;;  %s1470_s17 = int_to_ptr.vmem [resolvable:$true] %s48_s17 }
  0x27   :  { %s1249_s20 = scalar_lea.hbm %s1569_s0, 512 }
  0x28   :  { %p1250_p2 = scmp.ne.s32.totalorder %s1569_s0, %s1249_s20  ;;  %p1253_p3 = scmp.lt.u32.totalorder %s1249_s20, %s1569_s0 }
  0x2a   :  { %p1255_p4 = pnand %p1253_p3, %p1250_p2 }
  0x2c   :  { %1258 = shalt.err (!%p1255_p4)
}
  0x2d   :  { %s1259_s4 = scalar_lea.vmem %s25_s15, 512  ;;  %p1264_p6 = scmp.lt.s32.totalorder %s25_s15, %s25_s15 }
  0x2e   :  { %p1260_p5 = scmp.ne.s32.totalorder %s25_s15, %s1259_s4  ;;  %p1265_p7 = scmp.lt.s32.totalorder %s1259_s4, %s1259_s4 }
  0x30   :  { %p1266_p8 = por %p1265_p7, %p1264_p6 }
  0x32   :  { %p1267_p9 = pnand %p1266_p8, %p1260_p5 }
  0x34   :  { %1270 = shalt.err (!%p1267_p9)
}
  0x35   :  { %30 = dma.hbm_to_vmem [thread:$0]  %s1569_s0, 512, %s25_s15, [#allocation4], %s1371_s21, %s1371_s21, %s1372_s22  }
  0x36   :  { %s1271_s30 = scalar_lea.hbm %s1571_s2, 1024 }
  0x37   :  { %p1272_p10 = scmp.ne.s32.totalorder %s1571_s2, %s1271_s30  ;;  %p1275_p11 = scmp.lt.u32.totalorder %s1271_s30, %s1571_s2 }
  0x39   :  { %p1277_p12 = pnand %p1275_p11, %p1272_p10 }
  0x3b   :  { %1280 = shalt.err (!%p1277_p12)
}
  0x3c   :  { %s1281_s14 = scalar_lea.vmem %s1470_s17, 1024  ;;  %p1286_p0 = scmp.lt.s32.totalorder %s1470_s17, %s1470_s17 }
  0x3d   :  { %p1282_p13 = scmp.ne.s32.totalorder %s1470_s17, %s1281_s14  ;;  %p1287_p1 = scmp.lt.s32.totalorder %s1281_s14, %s1281_s14 }
  0x3f   :  { %p1288_p2 = por %p1287_p1, %p1286_p0 }
  0x41   :  { %p1289_p3 = pnand %p1288_p2, %p1282_p13 }
  0x43   :  { %1292 = shalt.err (!%p1289_p3)
}
  0x44   :  { %54 = dma.hbm_to_vmem [thread:$0]  %s1571_s2, 1024, %s1470_s17, [#allocation7], %s1371_s21, %s1371_s21, %s1372_s22  }
  0x45   :  { %s1375_s16 = smov [#allocation11]   ;;  %s1376_s19 = smov [#allocation12]  }
  0x46   :  { %s74_s18 = sshll.u32 %s1375_s16, 4  ;;  %s88_s20 = sshll.u32 %s1376_s19, 4  ;;  %s75_s18 = int_to_ptr.vmem [resolvable:$true] %s74_s18  ;;  %s1507_s20 = int_to_ptr.vmem [resolvable:$true] %s88_s20 }
  0x47   :  { %s1293_s25 = scalar_lea.hbm %s1574_s5, 1024 }
  0x48   :  { %p1294_p4 = scmp.ne.s32.totalorder %s1574_s5, %s1293_s25  ;;  %p1297_p5 = scmp.lt.u32.totalorder %s1293_s25, %s1574_s5 }
  0x4a   :  { %p1299_p6 = pnand %p1297_p5, %p1294_p4 }
  0x4c   :  { %1302 = shalt.err (!%p1299_p6)
}
  0x4d   :  { %s1303_s2 = scalar_lea.vmem %s75_s18, 1024  ;;  %p1308_p8 = scmp.lt.s32.totalorder %s75_s18, %s75_s18 }
  0x4e   :  { %p1304_p7 = scmp.ne.s32.totalorder %s75_s18, %s1303_s2  ;;  %p1309_p9 = scmp.lt.s32.totalorder %s1303_s2, %s1303_s2 }
  0x50   :  { %p1310_p10 = por %p1309_p9, %p1308_p8 }
  0x52   :  { %p1311_p11 = pnand %p1310_p10, %p1304_p7 }
  0x54   :  { %1314 = shalt.err (!%p1311_p11)
}
  0x55   :  { %80 = dma.hbm_to_vmem [thread:$0]  %s1574_s5, 1024, %s75_s18, [#allocation10], %s1371_s21, %s1371_s21, %s1372_s22  }
  0x56   :  { %s1315_s11 = scalar_lea.hbm %s1576_s7, 1024 }
  0x57   :  { %p1316_p12 = scmp.ne.s32.totalorder %s1576_s7, %s1315_s11  ;;  %p1319_p13 = scmp.lt.u32.totalorder %s1315_s11, %s1576_s7 }
  0x59   :  { %p1321_p0 = pnand %p1319_p13, %p1316_p12 }
  0x5b   :  { %1324 = shalt.err (!%p1321_p0)
}
  0x5c   :  { %s1325_s0 = scalar_lea.vmem %s1507_s20, 1024  ;;  %p1330_p2 = scmp.lt.s32.totalorder %s1507_s20, %s1507_s20 }
  0x5d   :  { %p1326_p1 = scmp.ne.s32.totalorder %s1507_s20, %s1325_s0  ;;  %p1331_p3 = scmp.lt.s32.totalorder %s1325_s0, %s1325_s0 }
  0x5f   :  { %p1332_p4 = por %p1331_p3, %p1330_p2 }
  0x61   :  { %p1333_p5 = pnand %p1332_p4, %p1326_p1 }
  0x63   :  { %1336 = shalt.err (!%p1333_p5)
}
  0x64   :  { %94 = dma.hbm_to_vmem [thread:$0]  %s1576_s7, 1024, %s1507_s20, [#allocation13], %s1371_s21, %s1371_s21, %s1372_s22  }
  0x65   :  { %1359 = dma.done.wait [#allocation4], 512  }
  0x66   :  { %1360 = vsyncadd [#allocation4], 4294966784 }
  0x67   :  { %1361 = dma.done.wait [#allocation7], 1536  }
  0x68   :  { %1362 = vsyncadd [#allocation7], 4294965760 }
  0x69   :  { %1363 = dma.done.wait [#allocation10], 2048  }
  0x6a   :  { %1364 = vsyncadd [#allocation10], 4294965248 }
  0x6b   :  { %1365 = dma.done.wait [#allocation13], 1024  }
  0x6c   :  { %1366 = vsyncadd [#allocation13], 4294966272  ;;  %v1149_v0 = vld [vmem:[#allocation8] sm:$0xff]   ;;  %v1150_v1 = vld [vmem:[#allocation8 + $0x8] sm:$0xff]   ;;  %v1377_v14 = vmov 0.0   ;;  %vm1378_vm0 = vmmov 0  }
  0x6d   :  { %1043 = vmatprep.subr.bf16.mxu0 %v1149_v0  ;;  %v1151_v2 = vld [vmem:[#allocation8 + $0x10] sm:$0xff]   ;;  %v1152_v3 = vld [vmem:[#allocation8 + $0x18] sm:$0xff]   ;;  %v1157_v4 = vld [vmem:[#allocation3] sm:$0xff]   ;;  %1067 = vmatprep.subr.bf16.mxu1 %v1377_v14  ;;  %vm393_vm1 = vcmask 1041409   ;;  %vm395_vm2 = vcmask 1042434   ;;  %vm397_vm3 = vcmask 1043459  }
  0x6e   :  { %1044 = vmatpush3.bf16.msra.mxu0 %v1149_v0  ;;  %1059 = vmatprep.mubr.bf16.mxu0 %v1157_v4  ;;  %v1153_v5 = vld [vmem:[#allocation8 + $0x20] sm:$0xff]   ;;  %v1154_v6 = vld [vmem:[#allocation8 + $0x28] sm:$0xff]   ;;  %v1155_v7 = vld [vmem:[#allocation8 + $0x30] sm:$0xff]   ;;  %vm399_vm4 = vcmask 1044484   ;;  %vm401_vm5 = vcmask 1045509   ;;  %vm403_vm6 = vcmask 1046534  }
  0x6f   :  { %1045 = vmatprep.subr.bf16.mxu0 %v1150_v1  ;;  %v1156_v8 = vld [vmem:[#allocation8 + $0x38] sm:$0xff]   ;;  %v1158_v9 = vld [vmem:[#allocation3 + $0x8] sm:$0xff]   ;;  %v1159_v10 = vld [vmem:[#allocation3 + $0x10] sm:$0xff]   ;;  %1083 = vmatprep.mubr.msk.bf16.mxu1 %vm1378_vm0, %v1377_v14  ;;  %vm405_vm7 = vcmask 1047559   ;;  %s1380_s18 = smov [#allocation14]  }
  0x70   :  { %v1160_v11 = vld [vmem:[#allocation3 + $0x18] sm:$0xff]   ;;  %v1161_v12 = vld [vmem:[#allocation9] sm:$0xff]   ;;  %v1163_v15 = vld [vmem:[#allocation9 + $0x8] sm:$0xff]   ;;  %s940_s19 = sshll.u32 %s1380_s18, 4  ;;  %s941_s19 = int_to_ptr.vmem [resolvable:$true] %s940_s19 }
  0x71   :  { %v1162_v13 = vld [vmem:[#allocation11] sm:$0xff]   ;;  %v1164_v16 = vld [vmem:[#allocation11 + $0x8] sm:$0xff]   ;;  %v1165_v17 = vld [vmem:[#allocation9 + $0x10] sm:$0xff]   ;;  %p1342_p7 = scmp.lt.s32.totalorder %s941_s19, %s941_s19 }
  0x72   :  { %1046 = vmatpush3.bf16.msra.mxu0 %v1150_v1  ;;  %1068 = vmatpush3.bf16.msra.mxu1 %v1162_v13  ;;  %v1166_v18 = vld [vmem:[#allocation11 + $0x10] sm:$0xff]   ;;  %v1167_v19 = vld [vmem:[#allocation9 + $0x18] sm:$0xff]   ;;  %v1169_v21 = vld [vmem:[#allocation9 + $0x20] sm:$0xff]  }
  0x73   :  { %1047 = vmatprep.subr.bf16.mxu0 %v1151_v2  ;;  %1069 = vmatprep.subr.bf16.mxu1 %v1377_v14  ;;  %v1168_v20 = vld [vmem:[#allocation11 + $0x18] sm:$0xff]   ;;  %v1170_v22 = vld [vmem:[#allocation11 + $0x20] sm:$0xff]   ;;  %v1171_v23 = vld [vmem:[#allocation9 + $0x28] sm:$0xff]  }
  0x74   :  { %v1172_v24 = vld [vmem:[#allocation11 + $0x28] sm:$0xff]   ;;  %v1173_v25 = vld [vmem:[#allocation9 + $0x30] sm:$0xff]   ;;  %v1177_v26 = vld [vmem:[#allocation6] sm:$0xff]  }
  0x75   :  { %v1174_v27 = vld [vmem:[#allocation11 + $0x30] sm:$0xff]   ;;  %v1175_v28 = vld [vmem:[#allocation9 + $0x38] sm:$0xff]   ;;  %v1178_v30 = vld [vmem:[#allocation6 + $0x8] sm:$0xff]  }
  0x76   :  { %1048 = vmatpush3.bf16.msra.mxu0 %v1151_v2  ;;  %1070 = vmatpush3.bf16.msra.mxu1 %v1164_v16  ;;  %v1176_v29 = vld [vmem:[#allocation11 + $0x38] sm:$0xff]   ;;  %v1179_v31 = vld [vmem:[#allocation6 + $0x10] sm:$0xff]   ;;  %v1544_v32 = vld [vmem:[#allocation12] sm:$0xff]  }
  0x77   :  { %1049 = vmatprep.subr.bf16.mxu0 %v1152_v3  ;;  %1071 = vmatprep.subr.bf16.mxu1 %v1377_v14  ;;  %v1180_v33 = vld [vmem:[#allocation6 + $0x18] sm:$0xff]   ;;  %v955_v34 = vld [vmem:[%s1572_s3] ss:$0 sm:$0xff] }
  0x7a   :  { %1050 = vmatpush3.bf16.msra.mxu0 %v1152_v3  ;;  %1072 = vmatpush3.bf16.msra.mxu1 %v1166_v18 }
  0x7b   :  { %1051 = vmatprep.subr.bf16.mxu0 %v1153_v5  ;;  %1073 = vmatprep.subr.bf16.mxu1 %v1377_v14 }
  0x7e   :  { %1052 = vmatpush3.bf16.msra.mxu0 %v1153_v5  ;;  %1074 = vmatpush3.bf16.msra.mxu1 %v1168_v20 }
  0x7f   :  { %1053 = vmatprep.subr.bf16.mxu0 %v1154_v6  ;;  %1075 = vmatprep.subr.bf16.mxu1 %v1377_v14 }
  0x82   :  { %1054 = vmatpush3.bf16.msra.mxu0 %v1154_v6  ;;  %1076 = vmatpush3.bf16.msra.mxu1 %v1170_v22 }
  0x83   :  { %1055 = vmatprep.subr.bf16.mxu0 %v1155_v7  ;;  %1077 = vmatprep.subr.bf16.mxu1 %v1377_v14 }
  0x86   :  { %1056 = vmatpush3.bf16.msra.mxu0 %v1155_v7  ;;  %1078 = vmatpush3.bf16.msra.mxu1 %v1172_v24 }
  0x87   :  { %1057 = vmatprep.subr.bf16.mxu0 %v1156_v8  ;;  %1079 = vmatprep.subr.bf16.mxu1 %v1377_v14 }
  0x8a   :  { %1058 = vmatpush3.bf16.msra.mxu0 %v1156_v8  ;;  %1080 = vmatpush3.bf16.msra.mxu1 %v1174_v27 }
  0x8b   :  { %1087 = vmatprep.subr.bf16.mxu0 %v1161_v12  ;;  %1081 = vmatprep.subr.bf16.mxu1 %v1377_v14 }
  0x8d   :  { %1060 = vmatmul.mubr.bf16.vlgmr.msra.gmra.mrb[0].mxu0 %v1158_v9 }
  0x8e   :  { %1063 = vmatprep.mubr.bf16.mxu0 %v1159_v10  ;;  %1088 = vmatpush3.bf16.msra.mxu0 %v1161_v12 }
  0x8f   :  { %1089 = vmatprep.subr.bf16.mxu0 %v1163_v15  ;;  %1082 = vmatpush3.bf16.msra.mxu1 %v1176_v29 }
  0x90   :  { %1111 = vmatprep.subr.bf16.mxu1 %v1544_v32 }
  0x92   :  { %1090 = vmatpush3.bf16.msra.mxu0 %v1163_v15 }
  0x93   :  { %1091 = vmatprep.subr.bf16.mxu0 %v1165_v17 }
  0x95   :  { %1064 = vmatmul.mubr.bf16.gmra.mrb[4].mxu0 %v1160_v11 }
  0x96   :  { %1092 = vmatpush3.bf16.msra.mxu0 %v1165_v17  ;;  %1103 = vmatprep.mubr.bf16.mxu0 %v1177_v26 }
  0x97   :  { %1093 = vmatprep.subr.bf16.mxu0 %v1167_v19 }
  0x9a   :  { %1094 = vmatpush3.bf16.msra.mxu0 %v1167_v19 }
  0x9b   :  { %1095 = vmatprep.subr.bf16.mxu0 %v1169_v21 }
  0x9e   :  { %1096 = vmatpush3.bf16.msra.mxu0 %v1169_v21 }
  0x9f   :  { %1097 = vmatprep.subr.bf16.mxu0 %v1171_v23 }
  0xa2   :  { %1098 = vmatpush3.bf16.msra.mxu0 %v1171_v23 }
  0xa3   :  { %1099 = vmatprep.subr.bf16.mxu0 %v1173_v25 }
  0xa6   :  { %1100 = vmatpush3.bf16.msra.mxu0 %v1173_v25 }
  0xa7   :  { %1101 = vmatprep.subr.bf16.mxu0 %v1175_v28 }
  0xaa   :  { %1102 = vmatpush3.bf16.msra.mxu0 %v1175_v28 }
  0xad   :  { %1104 = vmatmul.mubr.bf16.vlgmr.msra.gmra.mrb[8].mxu0 %v1178_v30 }
  0xae   :  { %1107 = vmatprep.mubr.bf16.mxu0 %v1179_v31 }
  0xb5   :  { %1108 = vmatmul.mubr.bf16.gmra.mrb[12].mxu0 %v1180_v33 }
 0x160   :  { %v1061_v35 = vpop.f32.mrb[0].mxu0 }
 0x161   :  { %v266_v36 = vadd.f32 %v1061_v35, %v955_v34  ;;  %v257_v37 = vpop.f32.mrb[1].mxu0 }
 0x162   :  { %v258_v38 = vadd.f32 %v955_v34, %v257_v37  ;;  %v1062_v39 = vpop.f32.mrb[2].mxu0 }
 0x163   :  { %1189 = vtanh.f32 %v266_v36  ;;  %v269_v40 = vadd.f32 %v1062_v39, %v955_v34  ;;  %v260_v41 = vpop.f32.mrb[3].mxu0 }
 0x164   :  { %1191 = vtanh.f32 %v258_v38  ;;  %v261_v42 = vadd.f32 %v955_v34, %v260_v41 }
 0x165   :  { %1193 = vtanh.f32 %v269_v40 }
 0x166   :  { %1195 = vtanh.f32 %v261_v42 }
 0x168   :  { %v1065_v43 = vpop.f32.mrb[4].mxu0 }
 0x169   :  { %v282_v44 = vadd.f32 %v1065_v43, %v955_v34  ;;  %v273_v45 = vpop.f32.mrb[5].mxu0 }
 0x16a   :  { %v274_v46 = vadd.f32 %v955_v34, %v273_v45  ;;  %v1066_v47 = vpop.f32.mrb[6].mxu0 }
 0x16b   :  { %1197 = vtanh.f32 %v282_v44  ;;  %v285_v48 = vadd.f32 %v1066_v47, %v955_v34  ;;  %v276_v49 = vpop.f32.mrb[7].mxu0 }
 0x16c   :  { %1199 = vtanh.f32 %v274_v46  ;;  %v277_v50 = vadd.f32 %v955_v34, %v276_v49 }
 0x16d   :  { %v1190_v51 = vpop.eup %1189  ;;  %1201 = vtanh.f32 %v285_v48 }
 0x16e   :  { %v1192_v52 = vpop.eup %1191  ;;  %v308_v53 = vrot.slane %v1190_v51, 4  ;;  %1203 = vtanh.f32 %v277_v50 }
 0x16f   :  { %v1194_v54 = vpop.eup %1193  ;;  %v296_v55 = vrot.slane %v1192_v52, 4 }
 0x170   :  { %v1196_v56 = vpop.eup %1195  ;;  %v309_v57 = vadd.f32 %v1190_v51, %v308_v53  ;;  %v314_v58 = vrot.slane %v1194_v54, 4 }
 0x171   :  { %v297_v59 = vadd.f32 %v1192_v52, %v296_v55  ;;  %v302_v60 = vrot.slane %v1196_v56, 4 }
 0x172   :  { %v310_v61 = vrot.slane %v309_v57, 2  ;;  %v315_v62 = vadd.f32 %v1194_v54, %v314_v58 }
 0x173   :  { %v298_v63 = vrot.slane %v297_v59, 2  ;;  %v303_v0 = vadd.f32 %v1196_v56, %v302_v60 }
 0x174   :  { %v311_v1 = vadd.f32 %v310_v61, %v309_v57  ;;  %v316_v2 = vrot.slane %v315_v62, 2 }
 0x175   :  { %v1198_v3 = vpop.eup %1197  ;;  %v299_v4 = vadd.f32 %v298_v63, %v297_v59  ;;  %v304_v5 = vrot.slane %v303_v0, 2 }
 0x176   :  { %v1200_v6 = vpop.eup %1199  ;;  %v312_v7 = vrot.slane %v311_v1, 1  ;;  %v317_v8 = vadd.f32 %v316_v2, %v315_v62  ;;  %v332_v9 = vrot.slane %v1198_v3, 4 }
 0x177   :  { %v1202_v10 = vpop.eup %1201  ;;  %v300_v11 = vrot.slane %v299_v4, 1  ;;  %v305_v12 = vadd.f32 %v304_v5, %v303_v0  ;;  %v320_v13 = vrot.slane %v1200_v6, 4 }
 0x178   :  { %v1204_v14 = vpop.eup %1203  ;;  %v313_v15 = vadd.f32 %v312_v7, %v311_v1  ;;  %v318_v16 = vrot.slane %v317_v8, 1  ;;  %v333_v17 = vadd.f32 %v1198_v3, %v332_v9  ;;  %v338_v18 = vrot.slane %v1202_v10, 4 }
 0x179   :  { %v301_v19 = vadd.f32 %v300_v11, %v299_v4  ;;  %v306_v20 = vrot.slane %v305_v12, 1  ;;  %v321_v21 = vadd.f32 %v1200_v6, %v320_v13  ;;  %v326_v22 = vrot.slane %v1204_v14, 4  ;;  %v1183_v13 = vld [vmem:[#allocation12 + $0x10] sm:$0xff]  }
 0x17a   :  { %v347_v23 = vmul.f32 0.125, %v313_v15  ;;  %v319_v24 = vadd.f32 %v318_v16, %v317_v8  ;;  %v334_v25 = vrot.slane %v333_v17, 2  ;;  %v339_v26 = vadd.f32 %v1202_v10, %v338_v18  ;;  %v1185_v15 = vld [vmem:[#allocation12 + $0x20] sm:$0xff]  }
 0x17b   :  { %v345_v27 = vmul.f32 0.125, %v301_v19  ;;  %v307_v28 = vadd.f32 %v306_v20, %v305_v12  ;;  %v322_v29 = vrot.slane %v321_v21, 2  ;;  %v327_v30 = vadd.f32 %v1204_v14, %v326_v22  ;;  %v1182_v12 = vld [vmem:[#allocation12 + $0x8] sm:$0xff]   ;;  %v1184_v14 = vld [vmem:[#allocation12 + $0x18] sm:$0xff]  }
 0x17c   :  { %v348_v31 = vmul.f32 0.125, %v319_v24  ;;  %v335_v33 = vadd.f32 %v334_v25, %v333_v17  ;;  %v340_v34 = vrot.slane %v339_v26, 2  ;;  %v355_v39 = vpack.c.bf16 %v347_v23, %v347_v23  ;;  %v1186_v19 = vld [vmem:[#allocation12 + $0x28] sm:$0xff]   ;;  %v1187_v23 = vld [vmem:[#allocation12 + $0x30] sm:$0xff]   ;;  %v1188_v25 = vld [vmem:[#allocation12 + $0x38] sm:$0xff]  }
 0x17d   :  { %v353_v35 = vpack.c.bf16 %v345_v27, %v345_v27  ;;  %v346_v36 = vmul.f32 0.125, %v307_v28  ;;  %v323_v37 = vadd.f32 %v322_v29, %v321_v21  ;;  %v328_v38 = vrot.slane %v327_v30, 2 }
 0x17e   :  { %v336_v40 = vrot.slane %v335_v33, 1  ;;  %v341_v41 = vadd.f32 %v340_v34, %v339_v26  ;;  %v356_v42 = vpack.c.bf16 %v348_v31, %v348_v31  ;;  %v387_v52 = vunpack.c.l.b16 %v355_v39 }
 0x17f   :  { %v354_v43 = vpack.c.bf16 %v346_v36, %v346_v36  ;;  %v324_v44 = vrot.slane %v323_v37, 1  ;;  %v329_v45 = vadd.f32 %v328_v38, %v327_v30  ;;  %v385_v48 = vunpack.c.l.b16 %v353_v35 }
 0x180   :  { %v337_v46 = vadd.f32 %v336_v40, %v335_v33  ;;  %v342_v47 = vrot.slane %v341_v41, 1  ;;  %v388_v55 = vunpack.c.l.b16 %v356_v42  ;;  %v1105_v16 = vpop.f32.mrb[8].mxu0  ;;  %v1379_v26 = vmov 1966171168  }
 0x181   :  { %v386_v49 = vunpack.c.l.b16 %v354_v43  ;;  %v325_v50 = vadd.f32 %v324_v44, %v323_v37  ;;  %v330_v51 = vrot.slane %v329_v45, 1  ;;  %v627_v17 = vpop.f32.mrb[9].mxu0  ;;  %v661_v27 = vunpack.c.l.s4 %v1379_v26 }
 0x182   :  { %v343_v53 = vadd.f32 %v342_v47, %v341_v41  ;;  %v351_v54 = vmul.f32 0.125, %v337_v46  ;;  %v1106_v18 = vpop.f32.mrb[10].mxu0  ;;  %v663_v28 = vlaneseq }
 0x183   :  { %v331_v56 = vadd.f32 %v330_v51, %v329_v45  ;;  %v349_v57 = vmul.f32 0.125, %v325_v50  ;;  %v394_v58 = vsel %vm393_vm1, %v386_v49, %v385_v48  ;;  %v630_v20 = vpop.f32.mrb[11].mxu0  ;;  %v662_v29 = vunpack.c.0.s8 %v661_v27  ;;  %v988_v49 = vld [vmem:[%s1575_s6] ss:$0 sm:$0xff] }
 0x184   :  { %v352_v59 = vmul.f32 0.125, %v343_v53  ;;  %v396_v60 = vsel %vm395_vm2, %v387_v52, %v394_v58  ;;  %v359_v0 = vpack.c.bf16 %v351_v54, %v351_v54  ;;  %v664_v30 = vshrl.u32 %v663_v28, 7 }
 0x185   :  { %v350_v61 = vmul.f32 0.125, %v331_v56  ;;  %v357_v62 = vpack.c.bf16 %v349_v57, %v349_v57  ;;  %v398_v63 = vsel %vm397_vm3, %v388_v55, %v396_v60 }
 0x186   :  { %v360_v2 = vpack.c.bf16 %v352_v59, %v352_v59  ;;  %v391_v6 = vunpack.c.l.b16 %v359_v0  ;;  %v665_v31 = vsub.s32 %v662_v29, %v664_v30  ;;  %v710_v37 = vsub.s32 0, %v664_v30 }
 0x187   :  { %v358_v1 = vpack.c.bf16 %v350_v61, %v350_v61  ;;  %v389_v3 = vunpack.c.l.b16 %v357_v62 }
 0x188   :  { %v392_v7 = vunpack.c.l.b16 %v360_v2  ;;  %v1109_v21 = vpop.f32.mrb[12].mxu0 }
 0x189   :  { %v390_v4 = vunpack.c.l.b16 %v358_v1  ;;  %v400_v5 = vsel %vm399_vm4, %v389_v3, %v398_v63  ;;  %v643_v22 = vpop.f32.mrb[13].mxu0 }
 0x18b   :  { %v402_v8 = vsel %vm401_vm5, %v390_v4, %v400_v5 }
 0x18c   :  { %v404_v9 = vsel %vm403_vm6, %v391_v6, %v402_v8 }
 0x18d   :  { %v406_v10 = vsel %vm405_vm7, %v392_v7, %v404_v9 }
 0x18e   :  { %v407_v11 = vpack.c.b16 %v406_v10, %v406_v10 }
 0x190   :  { %1084 = vmatmul.mubr.bf16.vlgmr.msra.gmra.mrb[0].mxu1 %v407_v11 }
 0x191   :  { %1112 = vmatpush3.bf16.msra.mxu1 %v1544_v32  ;;  %v1110_v32 = vpop.f32.mrb[14].mxu0 }
 0x192   :  { %1113 = vmatprep.subr.bf16.mxu1 %v1182_v12  ;;  %v646_v24 = vpop.f32.mrb[15].mxu0 }
 0x195   :  { %1114 = vmatpush3.bf16.msra.mxu1 %v1182_v12 }
 0x196   :  { %1115 = vmatprep.subr.bf16.mxu1 %v1183_v13 }
 0x199   :  { %1116 = vmatpush3.bf16.msra.mxu1 %v1183_v13 }
 0x19a   :  { %1117 = vmatprep.subr.bf16.mxu1 %v1184_v14 }
 0x19d   :  { %1118 = vmatpush3.bf16.msra.mxu1 %v1184_v14 }
 0x19e   :  { %1119 = vmatprep.subr.bf16.mxu1 %v1185_v15 }
 0x1a1   :  { %1120 = vmatpush3.bf16.msra.mxu1 %v1185_v15 }
 0x1a2   :  { %1121 = vmatprep.subr.bf16.mxu1 %v1186_v19 }
 0x1a5   :  { %1122 = vmatpush3.bf16.msra.mxu1 %v1186_v19 }
 0x1a6   :  { %1123 = vmatprep.subr.bf16.mxu1 %v1187_v23 }
 0x1a9   :  { %1124 = vmatpush3.bf16.msra.mxu1 %v1187_v23 }
 0x1aa   :  { %1125 = vmatprep.subr.bf16.mxu1 %v1188_v25 }
 0x1ad   :  { %1126 = vmatpush3.bf16.msra.mxu1 %v1188_v25 }
 0x263   :  { %v491_v33 = vpop.f32.mrb[0].mxu1 }
 0x264   :  { %v659_v34 = vcombine.high %v491_v33, %v491_v33  ;;  %v666_v35 = vrot.slane %v491_v33, %v665_v31  ;;  %v1085_v36 = vpop.f32.mrb[1].mxu1 }
 0x265   :  { %v494_v38 = vpop.f32.mrb[2].mxu1 }
 0x266   :  { %v673_v39 = vrot.slane %v659_v34, %v665_v31  ;;  %v674_v40 = vcombine.high %v666_v35, %v666_v35  ;;  %v682_v41 = vrot.slane %v666_v35, %v665_v31  ;;  %v1086_v42 = vpop.f32.mrb[3].mxu1 }
 0x268   :  { %v675_v43 = vcombine.high %v673_v39, %v673_v39  ;;  %v689_v44 = vrot.slane %v673_v39, %v665_v31  ;;  %v696_v45 = vrot.slane %v674_v40, %v665_v31  ;;  %v704_v46 = vcombine.high %v682_v41, %v682_v41 }
 0x269   :  { %v711_v47 = vrot.slane %v682_v41, %v710_v37 }
 0x26a   :  { %v719_v48 = vrot.slane %v704_v46, %v710_v37  ;;  %v706_v50 = vcombine.high %v696_v45, %v696_v45  ;;  %v715_v51 = vrot.slane %v696_v45, %v710_v37  ;;  %v705_v52 = vcombine.high %v689_v44, %v689_v44 }
 0x26b   :  { %v748_v53 = vadd.f32 %v711_v47, %v627_v17  ;;  %v727_v54 = vrot.slane %v689_v44, %v710_v37  ;;  %v703_v55 = vrot.slane %v675_v43, %v665_v31 }
 0x26c   :  { %v750_v56 = vadd.f32 %v1105_v16, %v719_v48  ;;  %v723_v57 = vrot.slane %v706_v50, %v710_v37  ;;  %v749_v58 = vadd.f32 %v715_v51, %v630_v20  ;;  %v735_v59 = vrot.slane %v705_v52, %v710_v37 }
 0x26d   :  { %v763_v60 = vadd.f32 %v988_v49, %v748_v53  ;;  %v752_v61 = vadd.f32 %v727_v54, %v643_v22  ;;  %v707_v62 = vcombine.high %v703_v55, %v703_v55  ;;  %v731_v63 = vrot.slane %v703_v55, %v710_v37 }
 0x26e   :  { %v765_v0 = vadd.f32 %v988_v49, %v750_v56  ;;  %v751_v1 = vadd.f32 %v1106_v18, %v723_v57  ;;  %v764_v2 = vadd.f32 %v988_v49, %v749_v58  ;;  %v754_v3 = vadd.f32 %v1109_v21, %v735_v59 }
 0x26f   :  { %v767_v4 = vadd.f32 %v988_v49, %v752_v61  ;;  %v739_v5 = vrot.slane %v707_v62, %v710_v37  ;;  %v753_v6 = vadd.f32 %v731_v63, %v646_v24  ;;  %v771_v7 = vmax.f32 %v763_v60, 0.0 }
 0x270   :  { %v766_v8 = vadd.f32 %v988_v49, %v751_v1  ;;  %v772_v9 = vmax.f32 %v764_v2, 0.0  ;;  %v769_v10 = vadd.f32 %v988_v49, %v754_v3  ;;  %v773_v13 = vmax.f32 %v765_v0, 0.0 }
 0x271   :  { %v755_v11 = vadd.f32 %v1110_v32, %v739_v5  ;;  %v768_v12 = vadd.f32 %v988_v49, %v753_v6  ;;  %v775_v16 = vmax.f32 %v767_v4, 0.0  ;;  %v989_v32 = vld [vmem:[%s1577_s8] ss:$0 sm:$0xff]  ;;  %s1337_s8 = scalar_lea.vmem %s941_s19, 1024 }
 0x272   :  { %v774_v14 = vmax.f32 %v766_v8, 0.0  ;;  %v779_v15 = vpack.c.bf16 %v772_v9, %v771_v7  ;;  %v777_v18 = vmax.f32 %v769_v10, 0.0  ;;  %p1338_p6 = scmp.ne.s32.totalorder %s941_s19, %s1337_s8  ;;  %p1343_p8 = scmp.lt.s32.totalorder %s1337_s8, %s1337_s8 }
 0x273   :  { %v770_v17 = vadd.f32 %v988_v49, %v755_v11  ;;  %v776_v19 = vmax.f32 %v768_v12, 0.0 }
 0x274   :  { %v780_v20 = vpack.c.bf16 %v774_v14, %v773_v13  ;;  %1127 = vmatprep.mubr.bf16.mxu1 %v779_v15  ;;  %p1344_p9 = por %p1343_p8, %p1342_p7 }
 0x275   :  { %v778_v22 = vmax.f32 %v770_v17, 0.0  ;;  %v781_v21 = vpack.c.bf16 %v776_v19, %v775_v16 }
 0x276   :  { %1128 = vmatmul.mubr.bf16.vlgmr.msra.gmra.mrb[4].mxu1 %v780_v20  ;;  %p1345_p10 = pnand %p1344_p9, %p1338_p6 }
 0x277   :  { %1131 = vmatprep.mubr.bf16.mxu1 %v781_v21  ;;  %v782_v23 = vpack.c.bf16 %v778_v22, %v777_v18 }
 0x27e   :  { %1132 = vmatmul.mubr.bf16.gmra.mrb[8].mxu1 %v782_v23 }
 0x349   :  { %v1129_v24 = vpop.f32.mrb[4].mxu1 }
 0x34a   :  { %v905_v25 = vadd.f32 %v1129_v24, %v989_v32  ;;  %v896_v26 = vpop.f32.mrb[5].mxu1 }
 0x34b   :  { %v897_v27 = vadd.f32 %v989_v32, %v896_v26  ;;  %v1130_v28 = vpop.f32.mrb[6].mxu1 }
 0x34c   :  { %929 = vst [vmem:[#allocation14 + $0x10] sm:$0xff] %v905_v25  ;;  %v908_v29 = vadd.f32 %v1130_v28, %v989_v32  ;;  %v899_v30 = vpop.f32.mrb[7].mxu1 }
 0x34d   :  { %927 = vst [vmem:[#allocation14] sm:$0xff] %v897_v27  ;;  %v900_v31 = vadd.f32 %v989_v32, %v899_v30 }
 0x34e   :  { %930 = vst [vmem:[#allocation14 + $0x18] sm:$0xff] %v908_v29 }
 0x34f   :  { %928 = vst [vmem:[#allocation14 + $0x8] sm:$0xff] %v900_v31 }
 0x351   :  { %v1133_v33 = vpop.f32.mrb[8].mxu1 }
 0x352   :  { %v921_v34 = vadd.f32 %v1133_v33, %v989_v32  ;;  %v912_v35 = vpop.f32.mrb[9].mxu1 }
 0x353   :  { %v913_v36 = vadd.f32 %v989_v32, %v912_v35  ;;  %v1134_v37 = vpop.f32.mrb[10].mxu1 }
 0x354   :  { %933 = vst [vmem:[#allocation14 + $0x30] sm:$0xff] %v921_v34  ;;  %v924_v38 = vadd.f32 %v1134_v37, %v989_v32  ;;  %v915_v39 = vpop.f32.mrb[11].mxu1 }
 0x355   :  { %931 = vst [vmem:[#allocation14 + $0x20] sm:$0xff] %v913_v36  ;;  %v916_v40 = vadd.f32 %v989_v32, %v915_v39 }
 0x356   :  { %934 = vst [vmem:[#allocation14 + $0x38] sm:$0xff] %v924_v38 }
 0x357   :  { %932 = vst [vmem:[#allocation14 + $0x28] sm:$0xff] %v916_v40 }
 0x358   :  { %1348 = shalt.err (!%p1345_p10)
}
 0x359   :  { %s1349_s24 = scalar_lea.hbm %s1578_s9, 1024 }
 0x35a   :  { %p1350_p11 = scmp.ne.s32.totalorder %s1578_s9, %s1349_s24  ;;  %p1353_p12 = scmp.lt.u32.totalorder %s1349_s24, %s1578_s9 }
 0x35c   :  { %p1355_p13 = pnand %p1353_p12, %p1350_p11 }
 0x35e   :  { %1358 = shalt.err (!%p1355_p13)
}
 0x35f   :  { %s1381_s27 = smov 128   ;;  %s1382_s2 = smov 8  }
 0x360   :  { %946 = dma.vmem_to_hbm [thread:$0]  %s941_s19, 1024, %s1578_s9, [#allocation5], %s1381_s27, %s1381_s27, %s1382_s2  }
 0x361   :  { %1367 = dma.done.wait [#allocation5], 1024  }
 0x362   :  { %1368 = vsyncadd [#allocation5], 4294966272 }
 0x363   :  { %950 = vsyncpa [#allocation4], 1 }
 0x364   :  { %951 = vsyncpa [#allocation7], 1 }
 0x365   :  { %952 = vsyncpa [#allocation10], 1 }
 0x366   :  { %953 = vsyncpa [#allocation13], 1 }
 0x367   :  { %954 = vsyncpa [#allocation5], 1 }

</bundles_post_ra>
